<compile_context>
chip_gen: v6e
topology: v6e:2x2x1
jax: 0.10.0
libtpu: 0.0.40
codegen_flags: <defaults>
</compile_context>

<pallas_src>
import functools
import math

import jax
import jax.numpy as jnp
import numpy as np
from jax.experimental import pallas as pl
from jax.experimental.pallas import tpu as pltpu

KERNEL_SIZE = 5
SIGMA = 1.0
PAD = KERNEL_SIZE // 2


def _gaussian_1d(ksize=KERNEL_SIZE, sigma=SIGMA):
    """1-D Gaussian taps; outer(g, g) reproduces the PyTorch 2-D kernel."""
    coords = np.arange(ksize, dtype=np.float64)
    mean = (ksize - 1) / 2.0
    g = np.exp(-(((coords - mean) / sigma) ** 2) / 2.0) / (sigma * math.sqrt(2.0 * math.pi))
    g = g / g.sum()  # PyTorch normalizes the 2-D kernel == normalizing each 1-D factor
    return g.astype(np.float32)


def _round_up(x, m):
    return (x + m - 1) // m * m


def _mse_blur_partial_kernel(dp_ref, out_ref, *, taps, h, w):
    """One grid step: separable Gaussian blur of a (TR, H+2P, W+2P) block of
    (x - y), then the block's partial sum of squared blurred differences."""
    dp = dp_ref[...].astype(jnp.float32)  # (TR, H+2P, W+2P)

    # Row (sublane-axis) blur -> (TR, H, W+2P).  Taps are compile-time floats,
    # so this is 5 VPU FMAs per element; exact f32 arithmetic.
    rows = taps[0] * dp[:, 0:h, :]
    for a in range(1, len(taps)):
        rows = rows + taps[a] * dp[:, a:a + h, :]

    # Column (lane-axis) blur -> (TR, H, W).
    blur = taps[0] * rows[:, :, 0:w]
    for b in range(1, len(taps)):
        blur = blur + taps[b] * rows[:, :, b:b + w]

    partial = jnp.sum(blur * blur)  # f32 scalar for this block
    # Lane-dense unmasked store of the per-block partial (wrapper reads [:,0,0]).
    out_ref[...] = jnp.full((1, 8, 128), partial, dtype=jnp.float32)


def mse_blur_loss(x, y, *, kernel_size=KERNEL_SIZE, sigma=SIGMA):
    """Pallas TPU implementation of MSE_blur_loss.forward (NCHW inputs)."""
    assert x.shape == y.shape and x.ndim == 4
    n, c, h, w = x.shape
    pad = kernel_size // 2
    taps = tuple(float(v) for v in _gaussian_1d(kernel_size, sigma))

    # blur is linear: blur(x) - blur(y) == blur(x - y).  Prepare a single
    # reflect-padded difference tensor (kept in the inputs' native dtype; the
    # kernel upcasts to f32).
    nc = n * c
    d = (x - y).reshape(nc, h, w)
    dp = jnp.pad(d, ((0, 0), (pad, pad), (pad, pad)), mode="reflect")
    hp, wp = h + 2 * pad, w + 2 * pad

    # Biggest row block that keeps the double-buffered input comfortably inside
    # scoped VMEM on every generation (v7x has the smallest VMEM).
    try:
        vmem_bytes = pltpu.get_tpu_info().vmem_capacity_bytes
    except Exception:  # conservative fallback if the query is unavailable
        vmem_bytes = 64 * 1024 * 1024
    budget = vmem_bytes // 16  # 2 pipeline buffers + generous headroom
    bytes_per_row = hp * wp * max(dp.dtype.itemsize, 4)
    max_rows = max(8, (budget // bytes_per_row) // 8 * 8)
    tr = min(max_rows, _round_up(nc, 8))

    nc_pad = _round_up(nc, tr)
    if nc_pad != nc:
        # zero rows blur to zero and contribute nothing to the sum of squares
        dp = jnp.pad(dp, ((0, nc_pad - nc), (0, 0), (0, 0)))
    num_blocks = nc_pad // tr

    kern = functools.partial(_mse_blur_partial_kernel, taps=taps, h=h, w=w)
    partials = pl.pallas_call(
        kern,
        out_shape=jax.ShapeDtypeStruct((num_blocks, 8, 128), jnp.float32),
        grid=(num_blocks,),
        in_specs=[pl.BlockSpec((tr, hp, wp), lambda i: (i, 0, 0))],
        out_specs=pl.BlockSpec((1, 8, 128), lambda i: (i, 0, 0)),
        compiler_params=pltpu.CompilerParams(
            dimension_semantics=("parallel",),
            vmem_limit_bytes=32 * 1024 * 1024,
        ),
    )(dp)

    # Tiny finalize in plain JAX (keeps the grid fully parallel across cores).
    return jnp.sum(partials[:, 0, 0]) / jnp.float32(n * c * h * w)


def mse_blur_loss_ref(x, y, *, kernel_size=KERNEL_SIZE, sigma=SIGMA):
    """Pure-JAX reference mirroring the PyTorch forward exactly:
    reflect pad -> depthwise 5x5 Gaussian conv on x and y -> MSE."""
    n, c, h, w = x.shape
    pad = kernel_size // 2
    g1 = jnp.asarray(_gaussian_1d(kernel_size, sigma))
    k2d = jnp.outer(g1, g1)  # (K, K), sums to 1
    weight = jnp.tile(k2d[None, None], (c, 1, 1, 1)).astype(jnp.float32)  # (C,1,K,K)

    def blur(v):
        vp = jnp.pad(v.astype(jnp.float32),
                     ((0, 0), (0, 0), (pad, pad), (pad, pad)), mode="reflect")
        return jax.lax.conv_general_dilated(
            vp, weight, window_strides=(1, 1), padding="VALID",
            dimension_numbers=("NCHW", "OIHW", "NCHW"),
            feature_group_count=c,
            precision=jax.lax.Precision.HIGHEST)

    bx = blur(x)
    by = blur(y)
    return jnp.mean((bx - by) ** 2)


if __name__ == "__main__":
    key = jax.random.PRNGKey(0)
    k1, k2 = jax.random.split(key)

    N, C, H, W = 2, 4, 16, 16
    x = jax.random.normal(k1, (N, C, H, W), jnp.float32)
    y = jax.random.normal(k2, (N, C, H, W), jnp.float32)

    out = jax.block_until_ready(mse_blur_loss(x, y))
    ref = jax.block_until_ready(mse_blur_loss_ref(x, y))

    assert jnp.allclose(out, ref, atol=1e-5, rtol=1e-5), (out, ref)
    print("KERNEL_OK")
</pallas_src>

<mosaic_0001>
module attributes {stable_mosaic.version = 11 : i64} {
  func.func @_mse_blur_partial_kernel(%arg0: i32, %arg1: memref<8x20x20xf32, #tpu.memory_space<vmem>>, %arg2: memref<1x8x128xf32, #tpu.memory_space<vmem>>) attributes {dimension_semantics = [#tpu.dimension_semantics<parallel>], iteration_bounds = array<i64: 1>, scalar_prefetch = 0 : i64, scratch_operands = 0 : i64, tpu.core_type = #tpu.core_type<tc>, window_params = [{transform_indices = @transform_0, window_bounds = array<i64: 8, 20, 20>}, {transform_indices = @transform_1, window_bounds = array<i64: 1, 8, 128>}]} {
    %c0 = arith.constant 0 : index
    %c0_0 = arith.constant 0 : index
    %c0_1 = arith.constant 0 : index
    %0 = vector.load %arg1[%c0, %c0_0, %c0_1] : memref<8x20x20xf32, #tpu.memory_space<vmem>>, vector<8x20x20xf32>
    %1 = vector.extract_strided_slice %0 {offsets = [0, 0, 0], sizes = [8, 16, 20], strides = [1, 1, 1]} : vector<8x20x20xf32> to vector<8x16x20xf32>
    %cst = arith.constant 0.054488685 : f32
    %2 = vector.broadcast %cst : f32 to vector<8x16x20xf32>
    %3 = arith.mulf %2, %1 : vector<8x16x20xf32>
    %4 = vector.extract_strided_slice %0 {offsets = [0, 1, 0], sizes = [8, 16, 20], strides = [1, 1, 1]} : vector<8x20x20xf32> to vector<8x16x20xf32>
    %cst_2 = arith.constant 0.244201347 : f32
    %5 = vector.broadcast %cst_2 : f32 to vector<8x16x20xf32>
    %6 = arith.mulf %5, %4 : vector<8x16x20xf32>
    %7 = arith.addf %3, %6 : vector<8x16x20xf32>
    %8 = vector.extract_strided_slice %0 {offsets = [0, 2, 0], sizes = [8, 16, 20], strides = [1, 1, 1]} : vector<8x20x20xf32> to vector<8x16x20xf32>
    %cst_3 = arith.constant 0.402619958 : f32
    %9 = vector.broadcast %cst_3 : f32 to vector<8x16x20xf32>
    %10 = arith.mulf %9, %8 : vector<8x16x20xf32>
    %11 = arith.addf %7, %10 : vector<8x16x20xf32>
    %12 = vector.extract_strided_slice %0 {offsets = [0, 3, 0], sizes = [8, 16, 20], strides = [1, 1, 1]} : vector<8x20x20xf32> to vector<8x16x20xf32>
    %cst_4 = arith.constant 0.244201347 : f32
    %13 = vector.broadcast %cst_4 : f32 to vector<8x16x20xf32>
    %14 = arith.mulf %13, %12 : vector<8x16x20xf32>
    %15 = arith.addf %11, %14 : vector<8x16x20xf32>
    %16 = vector.extract_strided_slice %0 {offsets = [0, 4, 0], sizes = [8, 16, 20], strides = [1, 1, 1]} : vector<8x20x20xf32> to vector<8x16x20xf32>
    %cst_5 = arith.constant 0.054488685 : f32
    %17 = vector.broadcast %cst_5 : f32 to vector<8x16x20xf32>
    %18 = arith.mulf %17, %16 : vector<8x16x20xf32>
    %19 = arith.addf %15, %18 : vector<8x16x20xf32>
    %20 = vector.extract_strided_slice %19 {offsets = [0, 0, 0], sizes = [8, 16, 16], strides = [1, 1, 1]} : vector<8x16x20xf32> to vector<8x16x16xf32>
    %cst_6 = arith.constant 0.054488685 : f32
    %21 = vector.broadcast %cst_6 : f32 to vector<8x16x16xf32>
    %22 = arith.mulf %21, %20 : vector<8x16x16xf32>
    %23 = vector.extract_strided_slice %19 {offsets = [0, 0, 1], sizes = [8, 16, 16], strides = [1, 1, 1]} : vector<8x16x20xf32> to vector<8x16x16xf32>
    %cst_7 = arith.constant 0.244201347 : f32
    %24 = vector.broadcast %cst_7 : f32 to vector<8x16x16xf32>
    %25 = arith.mulf %24, %23 : vector<8x16x16xf32>
    %26 = arith.addf %22, %25 : vector<8x16x16xf32>
    %27 = vector.extract_strided_slice %19 {offsets = [0, 0, 2], sizes = [8, 16, 16], strides = [1, 1, 1]} : vector<8x16x20xf32> to vector<8x16x16xf32>
    %cst_8 = arith.constant 0.402619958 : f32
    %28 = vector.broadcast %cst_8 : f32 to vector<8x16x16xf32>
    %29 = arith.mulf %28, %27 : vector<8x16x16xf32>
    %30 = arith.addf %26, %29 : vector<8x16x16xf32>
    %31 = vector.extract_strided_slice %19 {offsets = [0, 0, 3], sizes = [8, 16, 16], strides = [1, 1, 1]} : vector<8x16x20xf32> to vector<8x16x16xf32>
    %cst_9 = arith.constant 0.244201347 : f32
    %32 = vector.broadcast %cst_9 : f32 to vector<8x16x16xf32>
    %33 = arith.mulf %32, %31 : vector<8x16x16xf32>
    %34 = arith.addf %30, %33 : vector<8x16x16xf32>
    %35 = vector.extract_strided_slice %19 {offsets = [0, 0, 4], sizes = [8, 16, 16], strides = [1, 1, 1]} : vector<8x16x20xf32> to vector<8x16x16xf32>
    %cst_10 = arith.constant 0.054488685 : f32
    %36 = vector.broadcast %cst_10 : f32 to vector<8x16x16xf32>
    %37 = arith.mulf %36, %35 : vector<8x16x16xf32>
    %38 = arith.addf %34, %37 : vector<8x16x16xf32>
    %39 = arith.mulf %38, %38 : vector<8x16x16xf32>
    %40 = vector.shape_cast %39 : vector<8x16x16xf32> to vector<1x8x16x16xf32>
    %cst_11 = arith.constant dense<0.000000e+00> : vector<1xf32>
    %41 = vector.multi_reduction <add>, %40, %cst_11 [1, 2, 3] : vector<1x8x16x16xf32> to vector<1xf32>
    %42 = vector.shape_cast %41 : vector<1xf32> to vector<1x1x1x1xf32>
    %43 = vector.extract %42[0, 0, 0, 0] : f32 from vector<1x1x1x1xf32>
    %44 = vector.broadcast %43 : f32 to vector<1x8x128xf32>
    %c0_12 = arith.constant 0 : index
    %c0_13 = arith.constant 0 : index
    %c0_14 = arith.constant 0 : index
    %45 = vector.load %arg2[%c0_12, %c0_13, %c0_14] : memref<1x8x128xf32, #tpu.memory_space<vmem>>, vector<1x8x128xf32>
    tpu.vector_store %arg2[%c0_12, %c0_13, %c0_14], %44 {strides = array<i32>} : memref<1x8x128xf32, #tpu.memory_space<vmem>>, vector<1x8x128xf32>,
    return
  }
  func.func @transform_0(%arg0: i32) -> (i32, i32, i32) {
    %c0_i32 = arith.constant 0 : i32
    %c0_i32_0 = arith.constant 0 : i32
    %c0_i32_1 = arith.constant 0 : i32
    return %arg0, %c0_i32, %c0_i32_0 : i32, i32, i32
  }
  func.func @transform_1(%arg0: i32) -> (i32, i32, i32) {
    %c0_i32 = arith.constant 0 : i32
    %c0_i32_0 = arith.constant 0 : i32
    %c0_i32_1 = arith.constant 0 : i32
    return %arg0, %c0_i32, %c0_i32_0 : i32, i32, i32
  }
}

</mosaic_0001>

<bundles_post_ra>
// kernel: tpu_custom_call.1
= control target key start
LH: loop header
LB: loop body
LE: loop exit
PB: predicated region body
PF: predicated region fallthrough
CT: control target
= control target key end

     0   :  { %vm97_vm0 = vcmask 1046528   ;;  %vm218_vm1 = vcmask 1045504   ;;  %vm396_vm2 = vcmask 1043456   ;;  %vm291_vm3 = vcmask 1044480   ;;  %s923_s18 = smov 127   ;;  %s1368_s0 = inlined_call_operand.vmem [shape: f32[8,20,20], index: 0, kind: input, shape index: {}]   ;;  %s1369_s1 = inlined_call_operand.hbm [shape: f32[1,8,128], index: 1, kind: output, shape index: {}]  }
   0x1   :  { %v12_v0 = vld [vmem:[%s1368_s0 + $0x18] sm:$0xff]  ;;  %v13_v1 = vld [vmem:[%s1368_s0 + $0x20] sm:$0xff]  ;;  %v10_v17 = vld [vmem:[%s1368_s0 + $0x8] sm:$0xff] }
   0x2   :  { %v35_v2 = vmul.f32 0.054488685, %v12_v0  ;;  %v944_v3 = vmul.f32 0.054488685, %v13_v1  ;;  %v52_v4 = vmul.f32 0.24420135, %v12_v0 }
   0x3   :  { %v946_v5 = vmul.f32 0.24420135, %v13_v1  ;;  %v173_v6 = vmul.f32 0.40261996, %v12_v0  ;;  %v948_v7 = vmul.f32 0.40261996, %v13_v1 }
   0x4   :  { %v103_v8 = vrot.slane %v52_v4, 1  ;;  %v297_v9 = vrot.slane %v52_v4, 3  ;;  %v402_v10 = vrot.slane %v35_v2, 4  ;;  %v403_v11 = vrot.slane %v944_v3, 4  ;;  %v9_v12 = vld [vmem:[%s1368_s0] sm:$0xff] }
   0x5   :  { %v104_v13 = vrot.slane %v946_v5, 1  ;;  %v224_v14 = vrot.slane %v173_v6, 2  ;;  %v225_v15 = vrot.slane %v948_v7, 2  ;;  %v298_v16 = vrot.slane %v946_v5, 3  ;;  %v11_v25 = vld [vmem:[%s1368_s0 + $0x10] sm:$0xf] }
   0x6   :  { %v404_v18 = vsel %vm396_vm2, %v402_v10, %v403_v11  ;;  %v33_v19 = vmul.f32 0.054488685, %v9_v12  ;;  %v49_v20 = vmul.f32 0.24420135, %v9_v12  ;;  %v34_v23 = vmul.f32 0.054488685, %v10_v17 }
   0x7   :  { %v105_v21 = vsel %vm97_vm0, %v103_v8, %v104_v13  ;;  %v226_v22 = vsel %vm218_vm1, %v224_v14, %v225_v15  ;;  %v50_v24 = vmul.f32 0.24420135, %v10_v17  ;;  %v170_v28 = vmul.f32 0.40261996, %v9_v12  ;;  %v14_v38 = vld [vmem:[%s1368_s0 + $0x28] sm:$0xf] }
   0x8   :  { %v156_v26 = vadd.f32 %v105_v21, %v35_v2  ;;  %v98_v27 = vrot.slane %v49_v20, 1  ;;  %v171_v29 = vmul.f32 0.40261996, %v10_v17  ;;  %v299_v30 = vsel %vm291_vm3, %v297_v9, %v298_v16  ;;  %v15_v9 = vld [vmem:[%s1368_s0 + $0x30] sm:$0xff] }
   0x9   :  { %v99_v31 = vrot.slane %v50_v24, 1  ;;  %v292_v32 = vrot.slane %v49_v20, 3  ;;  %v293_v33 = vrot.slane %v50_v24, 3  ;;  %v219_v35 = vrot.slane %v170_v28, 2 }
   0xa   :  { %v277_v34 = vadd.f32 %v226_v22, %v156_v26  ;;  %v220_v36 = vrot.slane %v171_v29, 2  ;;  %v397_v37 = vrot.slane %v33_v19, 4  ;;  %v398_v40 = vrot.slane %v34_v23, 4 }
   0xb   :  { %v100_v39 = vsel %vm97_vm0, %v98_v27, %v99_v31  ;;  %v51_v41 = vmul.f32 0.24420135, %v11_v25  ;;  %v172_v42 = vmul.f32 0.40261996, %v11_v25  ;;  %v294_v46 = vsel %vm291_vm3, %v292_v32, %v293_v33 }
   0xc   :  { %v350_v43 = vadd.f32 %v299_v30, %v277_v34  ;;  %v154_v44 = vadd.f32 %v100_v39, %v33_v19  ;;  %v221_v45 = vsel %vm218_vm1, %v219_v35, %v220_v36  ;;  %v364_v50 = vmul.f32 0.054488685, %v11_v25 }
   0xd   :  { %v101_v47 = vrot.slane %v51_v41, 1  ;;  %v222_v48 = vrot.slane %v172_v42, 2  ;;  %v295_v49 = vrot.slane %v51_v41, 3  ;;  %v54_v53 = vmul.f32 0.24420135, %v14_v38 }
   0xe   :  { %v979_v51 = vadd.f32 %v404_v18, %v350_v43  ;;  %v275_v52 = vadd.f32 %v221_v45, %v154_v44  ;;  %v175_v54 = vmul.f32 0.40261996, %v14_v38  ;;  %v399_v55 = vsel %vm396_vm2, %v397_v37, %v398_v40 }
   0xf   :  { %v102_v56 = vsel %vm97_vm0, %v99_v31, %v101_v47  ;;  %v223_v57 = vsel %vm218_vm1, %v220_v36, %v222_v48  ;;  %v400_v58 = vrot.slane %v364_v50, 4  ;;  %v106_v62 = vrot.slane %v54_v53, 1 }
  0x10   :  { %v985_v59 = vmul.f32 0.24420135, %v979_v51  ;;  %v348_v60 = vadd.f32 %v294_v46, %v275_v52  ;;  %v155_v61 = vadd.f32 %v102_v56, %v34_v23  ;;  %v296_v63 = vsel %vm291_vm3, %v293_v33, %v295_v49 }
  0x11   :  { %v227_v0 = vrot.slane %v175_v54, 2  ;;  %v300_v1 = vrot.slane %v54_v53, 3  ;;  %v365_v2 = vmul.f32 0.054488685, %v14_v38  ;;  %v107_v8 = vsel %vm97_vm0, %v104_v13, %v106_v62 }
  0x12   :  { %521 = vrot.lane.b32.xlu1 %v985_v59, %s923_s18  ;;  %v990_v4 = vadd.f32 %v399_v55, %v348_v60  ;;  %v276_v6 = vadd.f32 %v223_v57, %v155_v61 }
  0x13   :  { %6 = vsyncpa [#allocation3], 0  ;;  %v401_v10 = vsel %vm396_vm2, %v398_v40, %v400_v58  ;;  %v157_v12 = vadd.f32 %v107_v8, %v944_v3  ;;  %v228_v14 = vsel %vm218_vm1, %v225_v15, %v227_v0  ;;  %v405_v17 = vrot.slane %v365_v2, 4  ;;  %v16_v18 = vld [vmem:[%s1368_s0 + $0x38] sm:$0xff]  ;;  %s924_s23 = smov 126   ;;  %v18_v49 = vld [vmem:[%s1368_s0 + $0x48] sm:$0xff] }
  0x14   :  { %v485_v13 = vmul.f32 0.24420135, %v990_v4  ;;  %v581_v19 = vmul.f32 0.40261996, %v990_v4  ;;  %v349_v20 = vadd.f32 %v296_v63, %v276_v6  ;;  %v301_v21 = vsel %vm291_vm3, %v298_v16, %v300_v1  ;;  %v17_v3 = vld [vmem:[%s1368_s0 + $0x40] sm:$0xf] }
  0x15   :  { %v278_v22 = vadd.f32 %v228_v14, %v157_v12  ;;  %v406_v7 = vsel %vm396_vm2, %v403_v11, %v405_v17  ;;  %v1012_v15 = vmul.f32 0.054488685, %v16_v18  ;;  %v55_v23 = vmul.f32 0.24420135, %v15_v9  ;;  %v19_v50 = vld [vmem:[%s1368_s0 + $0x50] sm:$0xff]  ;;  %s925_s30 = smov 125  }
  0x16   :  { %517 = vrot.lane.b32.xlu0 %v485_v13, %s923_s18  ;;  %613 = vrot.lane.b32.xlu1 %v581_v19, %s924_s23  ;;  %v1016_v24 = vadd.f32 %v401_v10, %v349_v20  ;;  %v56_v25 = vmul.f32 0.24420135, %v16_v18  ;;  %v176_v26 = vmul.f32 0.40261996, %v15_v9  ;;  %v177_v5 = vmul.f32 0.40261996, %v16_v18 }
  0x17   :  { %v351_v27 = vadd.f32 %v301_v21, %v278_v22  ;;  %v37_v16 = vmul.f32 0.054488685, %v15_v9  ;;  %v108_v28 = vrot.slane %v55_v23, 1  ;;  %v302_v31 = vrot.slane %v55_v23, 3  ;;  %v20_v18 = vld [vmem:[%s1368_s0 + $0x58] sm:$0xf] }
  0x18   :  { %v486_v11 = vmul.f32 0.24420135, %v1016_v24  ;;  %v109_v29 = vrot.slane %v56_v25, 1  ;;  %v229_v30 = vrot.slane %v176_v26, 2  ;;  %v230_v33 = vrot.slane %v177_v5, 2  ;;  %s926_s8 = smov 124  }
  0x19   :  { %v1022_v32 = vadd.f32 %v406_v7, %v351_v27  ;;  %v303_v34 = vrot.slane %v56_v25, 3  ;;  %v407_v35 = vrot.slane %v37_v16, 4  ;;  %v582_v36 = vmul.f32 0.40261996, %v1016_v24 }
  0x1a   :  { %519 = vrot.lane.b32.xlu0 %v486_v11, %s923_s18  ;;  %v110_v37 = vsel %vm97_vm0, %v108_v28, %v109_v29  ;;  %v408_v38 = vrot.slane %v1012_v15, 4  ;;  %v57_v39 = vmul.f32 0.24420135, %v17_v3  ;;  %v231_v42 = vsel %vm218_vm1, %v229_v30, %v230_v33  ;;  %v21_v28 = vld [vmem:[%s1368_s0 + $0x60] sm:$0xff] }
  0x1b   :  { %v1029_v40 = vmul.f32 0.24420135, %v1022_v32  ;;  %v158_v41 = vadd.f32 %v110_v37, %v37_v16  ;;  %v304_v43 = vsel %vm291_vm3, %v302_v31, %v303_v34  ;;  %v178_v45 = vmul.f32 0.40261996, %v17_v3 }
  0x1c   :  { %v111_v44 = vrot.slane %v57_v39, 1  ;;  %v583_v46 = vmul.f32 0.40261996, %v979_v51  ;;  %v366_v48 = vmul.f32 0.054488685, %v17_v3  ;;  %v409_v52 = vsel %vm396_vm2, %v407_v35, %v408_v38  ;;  %v22_v3 = vld [vmem:[%s1368_s0 + $0x68] sm:$0xff] }
  0x1d   :  { %523 = vrot.lane.b32.xlu1 %v1029_v40, %s923_s18  ;;  %v279_v47 = vadd.f32 %v231_v42, %v158_v41  ;;  %v232_v54 = vrot.slane %v178_v45, 2  ;;  %v305_v55 = vrot.slane %v57_v39, 3  ;;  %v39_v58 = vmul.f32 0.054488685, %v18_v49  ;;  %v23_v45 = vld [vmem:[%s1368_s0 + $0x70] sm:$0xf] }
  0x1e   :  { %615 = vrot.lane.b32.xlu0 %v582_v36, %s924_s23  ;;  %v112_v53 = vsel %vm97_vm0, %v109_v29, %v111_v44  ;;  %v58_v61 = vmul.f32 0.24420135, %v18_v49  ;;  %v1047_v62 = vmul.f32 0.24420135, %v19_v50  ;;  %v179_v63 = vmul.f32 0.40261996, %v18_v49 }
  0x1f   :  { %v352_v56 = vadd.f32 %v304_v43, %v279_v47  ;;  %v159_v57 = vadd.f32 %v112_v53, %v1012_v15  ;;  %v233_v60 = vsel %vm218_vm1, %v230_v33, %v232_v54  ;;  %v410_v2 = vrot.slane %v366_v48, 4 }
  0x20   :  { %v180_v6 = vmul.f32 0.40261996, %v19_v50  ;;  %v306_v8 = vsel %vm291_vm3, %v303_v34, %v305_v55  ;;  %v113_v9 = vrot.slane %v58_v61, 1  ;;  %v114_v10 = vrot.slane %v1047_v62, 1 }
  0x21   :  { %677 = vrot.lane.b32.xlu1 %v485_v13, %s925_s30  ;;  %v1050_v0 = vadd.f32 %v409_v52, %v352_v56  ;;  %v280_v1 = vadd.f32 %v233_v60, %v159_v57  ;;  %v234_v12 = vrot.slane %v179_v63, 2  ;;  %v584_v13 = vmul.f32 0.40261996, %v1022_v32 }
  0x22   :  { %617 = vrot.lane.b32.xlu0 %v583_v46, %s924_s23  ;;  %v235_v17 = vrot.slane %v180_v6, 2  ;;  %v1062_v19 = vmul.f32 0.054488685, %v19_v50  ;;  %v115_v20 = vsel %vm97_vm0, %v113_v9, %v114_v10  ;;  %v411_v22 = vsel %vm396_vm2, %v408_v38, %v410_v2 }
  0x23   :  { %v1056_v14 = vmul.f32 0.24420135, %v1050_v0  ;;  %v353_v21 = vadd.f32 %v306_v8, %v280_v1  ;;  %v160_v7 = vadd.f32 %v115_v20, %v39_v58  ;;  %v307_v15 = vrot.slane %v58_v61, 3 }
  0x24   :  { %v236_v23 = vsel %vm218_vm1, %v234_v12, %v235_v17  ;;  %v308_v25 = vrot.slane %v1047_v62, 3  ;;  %v60_v26 = vmul.f32 0.24420135, %v20_v18  ;;  %v181_v5 = vmul.f32 0.40261996, %v20_v18 }
  0x25   :  { %525 = vrot.lane.b32.xlu1 %v1056_v14, %s923_s18  ;;  %v1072_v27 = vmul.f32 0.054488685, %v1016_v24  ;;  %v281_v29 = vadd.f32 %v236_v23, %v160_v7  ;;  %v412_v30 = vrot.slane %v39_v58, 4  ;;  %v413_v31 = vrot.slane %v1062_v19, 4 }
  0x26   :  { %679 = vrot.lane.b32.xlu0 %v486_v11, %s925_s30  ;;  %v116_v16 = vrot.slane %v60_v26, 1  ;;  %v1082_v11 = vadd.f32 %v411_v22, %v353_v21  ;;  %v1087_v24 = vmul.f32 0.054488685, %v990_v4  ;;  %v309_v33 = vsel %vm291_vm3, %v307_v15, %v308_v25 }
  0x27   :  { %v237_v34 = vrot.slane %v181_v5, 2  ;;  %v61_v36 = vmul.f32 0.24420135, %v21_v28  ;;  %v1091_v37 = vmul.f32 0.24420135, %v22_v3  ;;  %v354_v39 = vadd.f32 %v309_v33, %v281_v29 }
  0x28   :  { %v117_v35 = vsel %vm97_vm0, %v114_v10, %v116_v16  ;;  %v1097_v38 = vmul.f32 0.24420135, %v1082_v11  ;;  %v414_v4 = vsel %vm396_vm2, %v412_v30, %v413_v31  ;;  %v310_v43 = vrot.slane %v60_v26, 3 }
  0x29   :  { %681 = vrot.lane.b32.xlu1 %v985_v59, %s925_s30  ;;  %v585_v59 = vmul.f32 0.40261996, %v1050_v0  ;;  %v161_v41 = vadd.f32 %v117_v35, %v1062_v19  ;;  %v238_v42 = vsel %vm218_vm1, %v235_v17, %v237_v34  ;;  %v367_v44 = vmul.f32 0.054488685, %v20_v18  ;;  %v24_v18 = vld [vmem:[%s1368_s0 + $0x78] sm:$0xff] }
  0x2a   :  { %619 = vrot.lane.b32.xlu0 %v584_v13, %s924_s23  ;;  %v118_v46 = vrot.slane %v61_v36, 1  ;;  %v119_v47 = vrot.slane %v1091_v37, 1  ;;  %v182_v48 = vmul.f32 0.40261996, %v21_v28  ;;  %v183_v49 = vmul.f32 0.40261996, %v22_v3 }
  0x2b   :  { %v1110_v50 = vmul.f32 0.054488685, %v979_v51  ;;  %v1112_v52 = vadd.f32 %v414_v4, %v354_v39  ;;  %v282_v53 = vadd.f32 %v238_v42, %v161_v41  ;;  %v415_v54 = vrot.slane %v367_v44, 4  ;;  %v25_v13 = vld [vmem:[%s1368_s0 + $0x80] sm:$0xff] }
  0x2c   :  { %v41_v55 = vmul.f32 0.054488685, %v21_v28  ;;  %v63_v56 = vmul.f32 0.24420135, %v23_v45  ;;  %v311_v57 = vsel %vm291_vm3, %v308_v25, %v310_v43  ;;  %v120_v58 = vsel %vm97_vm0, %v118_v46, %v119_v47 }
  0x2d   :  { %759 = vrot.lane.b32.xlu1 %v1072_v27, %s926_s8  ;;  %v239_v60 = vrot.slane %v182_v48, 2  ;;  %v240_v61 = vrot.slane %v183_v49, 2  ;;  %v586_v51 = vmul.f32 0.40261996, %v1082_v11  ;;  %v1122_v62 = vmul.f32 0.24420135, %v1112_v52 }
  0x2e   :  { %757 = vrot.lane.b32.xlu0 %v1087_v24, %s926_s8  ;;  %v42_v63 = vmul.f32 0.054488685, %v22_v3  ;;  %v355_v1 = vadd.f32 %v311_v57, %v282_v53  ;;  %v162_v2 = vadd.f32 %v120_v58, %v41_v55  ;;  %v121_v6 = vrot.slane %v63_v56, 1 }
  0x2f   :  { %v184_v8 = vmul.f32 0.40261996, %v23_v45  ;;  %v416_v9 = vsel %vm396_vm2, %v413_v31, %v415_v54  ;;  %v241_v10 = vsel %vm218_vm1, %v239_v60, %v240_v61  ;;  %v312_v12 = vrot.slane %v61_v36, 3 }
  0x30   :  { %v313_v17 = vrot.slane %v1091_v37, 3  ;;  %v417_v19 = vrot.slane %v41_v55, 4  ;;  %v418_v20 = vrot.slane %v42_v63, 4  ;;  %v1141_v21 = vadd.f32 %v416_v9, %v355_v1  ;;  %v26_v37 = vld [vmem:[%s1368_s0 + $0x88] sm:$0xf] }
  0x31   :  { %621 = vrot.lane.b32.xlu1 %v585_v59, %s924_s23  ;;  %v283_v22 = vadd.f32 %v241_v10, %v162_v2  ;;  %v122_v7 = vsel %vm97_vm0, %v119_v47, %v121_v6  ;;  %v242_v15 = vrot.slane %v184_v8, 2  ;;  %v64_v25 = vmul.f32 0.24420135, %v24_v18 }
  0x32   :  { %527 = vrot.lane.b32.xlu0 %v1097_v38, %s923_s18  ;;  %v314_v23 = vsel %vm291_vm3, %v312_v12, %v313_v17  ;;  %v1145_v26 = vmul.f32 0.24420135, %v25_v13  ;;  %v419_v5 = vsel %vm396_vm2, %v417_v19, %v418_v20  ;;  %v163_v16 = vadd.f32 %v122_v7, %v42_v63 }
  0x33   :  { %v368_v28 = vmul.f32 0.054488685, %v23_v45  ;;  %v1154_v3 = vmul.f32 0.24420135, %v1141_v21  ;;  %v356_v29 = vadd.f32 %v314_v23, %v283_v22  ;;  %v243_v30 = vsel %vm218_vm1, %v240_v61, %v242_v15  ;;  %v27_v61 = vld [vmem:[%s1368_s0 + $0x90] sm:$0xff] }
  0x34   :  { %v315_v31 = vrot.slane %v63_v56, 3  ;;  %v123_v33 = vrot.slane %v64_v25, 1  ;;  %v124_v34 = vrot.slane %v1145_v26, 1  ;;  %v185_v35 = vmul.f32 0.40261996, %v24_v18 }
  0x35   :  { %761 = vrot.lane.b32.xlu1 %v1110_v50, %s926_s8  ;;  %v186_v36 = vmul.f32 0.40261996, %v25_v13  ;;  %v284_v59 = vadd.f32 %v243_v30, %v163_v16  ;;  %v1167_v39 = vadd.f32 %v419_v5, %v356_v29  ;;  %v420_v41 = vrot.slane %v368_v28, 4  ;;  %v29_v5 = vld [vmem:[%s1368_s0 + $0xa0] sm:$0xf] }
  0x36   :  { %683 = vrot.lane.b32.xlu0 %v1029_v40, %s925_s30  ;;  %v1137_v40 = vmul.f32 0.054488685, %v1022_v32  ;;  %v587_v32 = vmul.f32 0.40261996, %v1112_v52  ;;  %v316_v4 = vsel %vm291_vm3, %v313_v17, %v315_v31  ;;  %v43_v42 = vmul.f32 0.054488685, %v24_v18 }
  0x37   :  { %v125_v43 = vsel %vm97_vm0, %v123_v33, %v124_v34  ;;  %v244_v44 = vrot.slane %v185_v35, 2  ;;  %v245_v45 = vrot.slane %v186_v36, 2  ;;  %v66_v46 = vmul.f32 0.24420135, %v26_v37 }
  0x38   :  { %v357_v47 = vadd.f32 %v316_v4, %v284_v59  ;;  %v44_v48 = vmul.f32 0.054488685, %v25_v13  ;;  %v1177_v49 = vmul.f32 0.24420135, %v1167_v39  ;;  %v421_v53 = vsel %vm396_vm2, %v418_v20, %v420_v41 }
  0x39   :  { %623 = vrot.lane.b32.xlu1 %v586_v51, %s924_s23  ;;  %v164_v54 = vadd.f32 %v125_v43, %v43_v42  ;;  %v187_v55 = vmul.f32 0.40261996, %v26_v37  ;;  %v246_v56 = vsel %vm218_vm1, %v244_v44, %v245_v45  ;;  %v317_v57 = vrot.slane %v64_v25, 3 }
  0x3a   :  { %529 = vrot.lane.b32.xlu0 %v1122_v62, %s923_s18  ;;  %v318_v58 = vrot.slane %v1145_v26, 3  ;;  %v126_v60 = vrot.slane %v66_v46, 1  ;;  %v1190_v51 = vmul.f32 0.054488685, %v1082_v11  ;;  %v1192_v63 = vadd.f32 %v421_v53, %v357_v47  ;;  %v30_v47 = vld [vmem:[%s1368_s0 + $0xa8] sm:$0xff] }
  0x3b   :  { %v422_v1 = vrot.slane %v43_v42, 4  ;;  %v423_v2 = vrot.slane %v44_v48, 4  ;;  %v285_v6 = vadd.f32 %v246_v56, %v164_v54  ;;  %v247_v8 = vrot.slane %v187_v55, 2 }
  0x3c   :  { %v319_v9 = vsel %vm291_vm3, %v317_v57, %v318_v58  ;;  %v127_v10 = vsel %vm97_vm0, %v124_v34, %v126_v60  ;;  %v67_v12 = vmul.f32 0.24420135, %v27_v61  ;;  %v589_v11 = vmul.f32 0.40261996, %v1167_v39 }
  0x3d   :  { %763 = vrot.lane.b32.xlu1 %v1137_v40, %s926_s8  ;;  %v1204_v18 = vmul.f32 0.24420135, %v1192_v63  ;;  %v424_v13 = vsel %vm396_vm2, %v422_v1, %v423_v2  ;;  %v369_v19 = vmul.f32 0.054488685, %v26_v37  ;;  %v358_v20 = vadd.f32 %v319_v9, %v285_v6 }
  0x3e   :  { %685 = vrot.lane.b32.xlu0 %v1056_v14, %s925_s30  ;;  %v1163_v14 = vmul.f32 0.054488685, %v1050_v0  ;;  %v588_v0 = vmul.f32 0.40261996, %v1141_v21  ;;  %v165_v22 = vadd.f32 %v127_v10, %v44_v48  ;;  %v248_v7 = vsel %vm218_vm1, %v245_v45, %v247_v8 }
  0x3f   :  { %v320_v15 = vrot.slane %v66_v46, 3  ;;  %v128_v23 = vrot.slane %v67_v12, 1  ;;  %v188_v26 = vmul.f32 0.40261996, %v27_v61  ;;  %v1216_v16 = vmul.f32 0.054488685, %v1112_v52 }
  0x40   :  { %v1220_v28 = vadd.f32 %v424_v13, %v358_v20  ;;  %v286_v29 = vadd.f32 %v248_v7, %v165_v22  ;;  %v45_v31 = vmul.f32 0.054488685, %v27_v61  ;;  %v69_v36 = vmul.f32 0.24420135, %v29_v5  ;;  %v32_v20 = vld [vmem:[%s1368_s0 + $0xb8] sm:$0xf] }
  0x41   :  { %625 = vrot.lane.b32.xlu1 %v587_v32, %s924_s23  ;;  %v321_v30 = vsel %vm291_vm3, %v318_v58, %v320_v15  ;;  %v249_v34 = vrot.slane %v188_v26, 2  ;;  %v590_v52 = vmul.f32 0.40261996, %v1192_v63  ;;  %v190_v43 = vmul.f32 0.40261996, %v29_v5 }
  0x42   :  { %531 = vrot.lane.b32.xlu0 %v1154_v3, %s923_s18  ;;  %v1231_v4 = vmul.f32 0.24420135, %v1220_v28  ;;  %v359_v41 = vadd.f32 %v321_v30, %v286_v29  ;;  %v322_v45 = vrot.slane %v67_v12, 3  ;;  %v1243_v48 = vmul.f32 0.054488685, %v1141_v21 }
  0x43   :  { %v427_v53 = vrot.slane %v45_v31, 4  ;;  %v252_v57 = vrot.slane %v190_v43, 2  ;;  %v70_v61 = vmul.f32 0.24420135, %v30_v47  ;;  %v591_v21 = vmul.f32 0.40261996, %v1220_v28 }
  0x44   :  { %v370_v6 = vmul.f32 0.054488685, %v29_v5  ;;  %v191_v13 = vmul.f32 0.40261996, %v30_v47  ;;  %v1267_v22 = vmul.f32 0.054488685, %v1167_v39 }
  0x45   :  { %765 = vrot.lane.b32.xlu1 %v1163_v14, %s926_s8  ;;  %vm837_vm4 = vcmask 130048  }
  0x46   :  { %687 = vrot.lane.b32.xlu0 %v1097_v38, %s925_s30  ;;  %v28_v38 = vld [vmem:[%s1368_s0 + $0x98] sm:$0xff] }
  0x47   :  { %v1198_v17 = vmul.f32 0.24420135, %v28_v38  ;;  %v189_v32 = vmul.f32 0.40261996, %v28_v38  ;;  %v46_v59 = vmul.f32 0.054488685, %v28_v38 }
  0x49   :  { %627 = vrot.lane.b32.xlu1 %v588_v0, %s924_s23  ;;  %v129_v25 = vrot.slane %v1198_v17, 1  ;;  %v250_v35 = vrot.slane %v189_v32, 2  ;;  %v323_v46 = vrot.slane %v1198_v17, 3  ;;  %v131_v0 = vrot.slane %v69_v36, 1 }
  0x4a   :  { %533 = vrot.lane.b32.xlu0 %v1177_v49, %s923_s18  ;;  %v428_v54 = vrot.slane %v46_v59, 4  ;;  %v133_v17 = vrot.slane %v70_v61, 1  ;;  %v254_v32 = vrot.slane %v191_v13, 2 }
  0x4b   :  { %v130_v33 = vsel %vm97_vm0, %v128_v23, %v129_v25  ;;  %v251_v44 = vsel %vm218_vm1, %v249_v34, %v250_v35  ;;  %v324_v58 = vsel %vm291_vm3, %v322_v45, %v323_v46  ;;  %v132_v60 = vsel %vm97_vm0, %v129_v25, %v131_v0 }
  0x4c   :  { %v166_v42 = vadd.f32 %v130_v33, %v45_v31  ;;  %v429_v1 = vsel %vm396_vm2, %v427_v53, %v428_v54  ;;  %v167_v10 = vadd.f32 %v132_v60, %v46_v59  ;;  %v253_v12 = vsel %vm218_vm1, %v250_v35, %v252_v57 }
  0x4d   :  { %767 = vrot.lane.b32.xlu1 %v1190_v51, %s926_s8  ;;  %v47_v25 = vmul.f32 0.054488685, %v30_v47  ;;  %v327_v35 = vrot.slane %v70_v61, 3  ;;  %v193_v59 = vmul.f32 0.40261996, %v32_v20 }
  0x4e   :  { %689 = vrot.lane.b32.xlu0 %v1122_v62, %s925_s30  ;;  %v425_v62 = vrot.slane %v369_v19, 4  ;;  %v287_v56 = vadd.f32 %v251_v44, %v166_v42  ;;  %v288_v15 = vadd.f32 %v253_v12, %v167_v10  ;;  %v1295_v60 = vmul.f32 0.054488685, %v1220_v28 }
  0x4f   :  { %v257_v0 = vrot.slane %v193_v59, 2 }
  0x50   :  { %v426_v37 = vsel %vm396_vm2, %v423_v2, %v425_v62  ;;  %v325_v2 = vrot.slane %v69_v36, 3  ;;  %v360_v9 = vadd.f32 %v324_v58, %v287_v56  ;;  %v72_v62 = vmul.f32 0.24420135, %v32_v20 }
  0x51   :  { %629 = vrot.lane.b32.xlu1 %v589_v11, %s924_s23  ;;  %v1247_v55 = vadd.f32 %v426_v37, %v359_v41  ;;  %v1282_v41 = vmul.f32 0.054488685, %v1192_v63  ;;  %v371_v58 = vmul.f32 0.054488685, %v32_v20 }
  0x52   :  { %535 = vrot.lane.b32.xlu0 %v1204_v18, %s923_s18  ;;  %v465_v7 = vadd.f32 %v429_v1, %v360_v9  ;;  %v326_v23 = vsel %vm291_vm3, %v323_v46, %v325_v2  ;;  %v136_v37 = vrot.slane %v72_v62, 1  ;;  %v330_v57 = vrot.slane %v72_v62, 3 }
  0x53   :  { %v496_v8 = vmul.f32 0.24420135, %v1247_v55  ;;  %v592_v29 = vmul.f32 0.40261996, %v1247_v55  ;;  %v361_v33 = vadd.f32 %v326_v23, %v288_v15  ;;  %v1305_v28 = vmul.f32 0.054488685, %v1247_v55 }
  0x54   :  { %v497_v31 = vmul.f32 0.24420135, %v465_v7  ;;  %v593_v47 = vmul.f32 0.40261996, %v465_v7 }
  0x55   :  { %769 = vrot.lane.b32.xlu1 %v1216_v16, %s926_s8 }
  0x56   :  { %691 = vrot.lane.b32.xlu0 %v1154_v3, %s925_s30  ;;  %v31_v3 = vld [vmem:[%s1368_s0 + $0xb0] sm:$0xff]  ;;  %s927_s0 = smov [#allocation2]  }
  0x57   :  { %v1251_v38 = vmul.f32 0.24420135, %v31_v3  ;;  %v192_v19 = vmul.f32 0.40261996, %v31_v3  ;;  %v48_v30 = vmul.f32 0.054488685, %v31_v3 }
  0x59   :  { %631 = vrot.lane.b32.xlu1 %v590_v52, %s924_s23  ;;  %v134_v11 = vrot.slane %v1251_v38, 1  ;;  %v255_v5 = vrot.slane %v192_v19, 2  ;;  %v328_v52 = vrot.slane %v1251_v38, 3  ;;  %v433_v45 = vrot.slane %v48_v30, 4 }
  0x5a   :  { %537 = vrot.lane.b32.xlu0 %v1231_v4, %s923_s18 }
  0x5b   :  { %v135_v26 = vsel %vm97_vm0, %v133_v17, %v134_v11  ;;  %v256_v36 = vsel %vm218_vm1, %v254_v32, %v255_v5  ;;  %v329_v44 = vsel %vm291_vm3, %v327_v35, %v328_v52  ;;  %v137_v46 = vsel %vm97_vm0, %v134_v11, %v136_v37 }
  0x5c   :  { %v168_v34 = vadd.f32 %v135_v26, %v47_v25  ;;  %v169_v53 = vadd.f32 %v137_v46, %v48_v30  ;;  %v258_v56 = vsel %vm218_vm1, %v255_v5, %v257_v0 }
  0x5d   :  { %771 = vrot.lane.b32.xlu1 %v1243_v48, %s926_s8 }
  0x5e   :  { %693 = vrot.lane.b32.xlu0 %v1177_v49, %s925_s30  ;;  %v430_v49 = vrot.slane %v370_v6, 4  ;;  %v289_v43 = vadd.f32 %v256_v36, %v168_v34  ;;  %v290_v38 = vadd.f32 %v258_v56, %v169_v53 }
  0x60   :  { %v431_v39 = vsel %vm396_vm2, %v428_v54, %v430_v49  ;;  %v362_v3 = vadd.f32 %v329_v44, %v289_v43 }
  0x61   :  { %633 = vrot.lane.b32.xlu1 %v591_v21, %s924_s23  ;;  %v466_v42 = vadd.f32 %v431_v39, %v361_v33  ;;  %v435_v21 = vrot.slane %v371_v58, 4 }
  0x62   :  { %539 = vrot.lane.b32.xlu0 %v496_v8, %s923_s18 }
  0x63   :  { %v498_v63 = vmul.f32 0.24420135, %v466_v42  ;;  %v594_v1 = vmul.f32 0.40261996, %v466_v42  ;;  %v436_v9 = vsel %vm396_vm2, %v433_v45, %v435_v21  ;;  %v1321_v49 = vmul.f32 0.054488685, %v466_v42 }
  0x65   :  { %773 = vrot.lane.b32.xlu1 %v1267_v22, %s926_s8 }
  0x66   :  { %695 = vrot.lane.b32.xlu0 %v1204_v18, %s925_s30  ;;  %v432_v18 = vrot.slane %v47_v25, 4 }
  0x68   :  { %v434_v54 = vsel %vm396_vm2, %v432_v18, %v433_v45 }
  0x69   :  { %635 = vrot.lane.b32.xlu1 %v592_v29, %s924_s23  ;;  %v467_v61 = vadd.f32 %v434_v54, %v362_v3 }
  0x6a   :  { %541 = vrot.lane.b32.xlu0 %v497_v31, %s923_s18 }
  0x6b   :  { %v499_v2 = vmul.f32 0.24420135, %v467_v61  ;;  %v595_v12 = vmul.f32 0.40261996, %v467_v61  ;;  %v1328_v25 = vmul.f32 0.054488685, %v467_v61 }
  0x6d   :  { %775 = vrot.lane.b32.xlu1 %v1282_v41, %s926_s8 }
  0x6e   :  { %697 = vrot.lane.b32.xlu0 %v1231_v4, %s925_s30  ;;  %v331_v4 = vsel %vm291_vm3, %v328_v52, %v330_v57 }
  0x6f   :  { %v363_v6 = vadd.f32 %v331_v4, %v290_v38 }
  0x71   :  { %637 = vrot.lane.b32.xlu1 %v593_v47, %s924_s23  ;;  %v468_v10 = vadd.f32 %v436_v9, %v363_v6 }
  0x72   :  { %543 = vrot.lane.b32.xlu0 %v498_v63, %s923_s18 }
  0x73   :  { %v500_v17 = vmul.f32 0.24420135, %v468_v10  ;;  %v596_v55 = vmul.f32 0.40261996, %v468_v10  ;;  %v1324_v23 = vmul.f32 0.054488685, %v468_v10 }
  0x75   :  { %777 = vrot.lane.b32.xlu1 %v1295_v60, %s926_s8 }
  0x76   :  { %699 = vrot.lane.b32.xlu0 %v496_v8, %s925_s30  ;;  %v1312_v8 = vmul.f32 0.054488685, %v465_v7 }
  0x79   :  { %639 = vrot.lane.b32.xlu1 %v594_v1, %s924_s23 }
  0x7a   :  { %545 = vrot.lane.b32.xlu0 %v499_v2, %s923_s18 }
  0x7d   :  { %779 = vrot.lane.b32.xlu1 %v1305_v28, %s926_s8 }
  0x7e   :  { %701 = vrot.lane.b32.xlu0 %v497_v31, %s925_s30 }
  0x81   :  { %641 = vrot.lane.b32.xlu1 %v595_v12, %s924_s23 }
  0x82   :  { %547 = vrot.lane.b32.xlu0 %v500_v17, %s923_s18  ;;  %s886_s18 = sshll.u32 %s927_s0, 4  ;;  %s887_s18 = int_to_ptr.vmem [resolvable:$true] %s886_s18 }
  0x83   :  { %p906_p1 = scmp.lt.s32.totalorder %s887_s18, %s887_s18 }
  0x84   :  { %v522_v11 = vpop.permute.xlu1 %521 }
  0x85   :  { %781 = vrot.lane.b32.xlu1 %v1312_v8, %s926_s8  ;;  %v567_v62 = vadd.f32 %v522_v11, %v1110_v50 }
  0x86   :  { %703 = vrot.lane.b32.xlu0 %v498_v63, %s925_s30 }
  0x88   :  { %v518_v13 = vpop.permute.xlu0 %517  ;;  %v614_v19 = vpop.permute.xlu1 %613 }
  0x89   :  { %v565_v20 = vadd.f32 %v518_v13, %v1087_v24  ;;  %705 = vrot.lane.b32.xlu1 %v499_v2, %s925_s30 }
  0x8a   :  { %643 = vrot.lane.b32.xlu0 %v596_v55, %s924_s23 }
  0x8b   :  { %v661_v7 = vadd.f32 %v614_v19, %v565_v20 }
  0x8c   :  { %v520_v15 = vpop.permute.xlu0 %519 }
  0x8d   :  { %707 = vrot.lane.b32.xlu1 %v500_v17, %s925_s30  ;;  %v566_v26 = vadd.f32 %v520_v15, %v1072_v27  ;;  %s901_s30 = scalar_lea.vmem %s887_s18, 128 }
  0x8e   :  { %783 = vrot.lane.b32.xlu0 %v1321_v49, %s926_s8  ;;  %p902_p0 = scmp.ne.s32.totalorder %s887_s18, %s901_s30  ;;  %p907_p2 = scmp.lt.s32.totalorder %s901_s30, %s901_s30 }
  0x8f   :  { %v524_v24 = vpop.permute.xlu1 %523 }
  0x90   :  { %v616_v32 = vpop.permute.xlu0 %615  ;;  %v568_v27 = vadd.f32 %v524_v24, %v1137_v40  ;;  %p908_p3 = por %p907_p2, %p906_p1 }
  0x91   :  { %v662_v5 = vadd.f32 %v616_v32, %v566_v26  ;;  %787 = vrot.lane.b32.xlu1 %v1324_v23, %s926_s8 }
  0x92   :  { %785 = vrot.lane.b32.xlu0 %v1328_v25, %s926_s8  ;;  %p909_p4 = pnand %p908_p3, %p902_p0 }
  0x93   :  { %v678_v29 = vpop.permute.xlu1 %677 }
  0x94   :  { %v725_v39 = vadd.f32 %v678_v29, %v661_v7  ;;  %v618_v30 = vpop.permute.xlu0 %617 }
  0x95   :  { %v663_v31 = vadd.f32 %v618_v30, %v567_v62 }
  0x97   :  { %v526_v33 = vpop.permute.xlu1 %525 }
  0x98   :  { %v680_v34 = vpop.permute.xlu0 %679  ;;  %v569_v50 = vadd.f32 %v526_v33, %v1163_v14 }
  0x99   :  { %v726_v35 = vadd.f32 %v680_v34, %v662_v5 }
  0x9b   :  { %v682_v36 = vpop.permute.xlu1 %681 }
  0x9c   :  { %v727_v52 = vadd.f32 %v682_v36, %v663_v31  ;;  %v620_v37 = vpop.permute.xlu0 %619 }
  0x9d   :  { %v664_v59 = vadd.f32 %v620_v37, %v568_v27 }
  0x9f   :  { %v760_v42 = vpop.permute.xlu1 %759 }
  0xa0   :  { %v806_v43 = vadd.f32 %v760_v42, %v726_v35  ;;  %v758_v18 = vpop.permute.xlu0 %757 }
  0xa1   :  { %v805_v44 = vadd.f32 %v758_v18, %v725_v39 }
  0xa2   :  { %v822_v45 = vmul.f32 %v806_v43, %v806_v43 }
  0xa3   :  { %v821_v46 = vmul.f32 %v805_v44, %v805_v44  ;;  %v622_v0 = vpop.permute.xlu1 %621 }
  0xa4   :  { %v839_v47 = vsel %vm837_vm4, %v822_v45, 0.0  ;;  %v665_v63 = vadd.f32 %v622_v0, %v569_v50  ;;  %v528_v3 = vpop.permute.xlu0 %527 }
  0xa5   :  { %v838_v40 = vsel %vm837_vm4, %v821_v46, 0.0  ;;  %v570_v61 = vadd.f32 %v528_v3, %v1190_v51 }
  0xa6   :  { %v840_v53 = vadd.f32 %v839_v47, %v838_v40 }
  0xa7   :  { %v762_v54 = vpop.permute.xlu1 %761 }
  0xa8   :  { %v807_v56 = vadd.f32 %v762_v54, %v727_v52  ;;  %v684_v57 = vpop.permute.xlu0 %683 }
  0xa9   :  { %v728_v58 = vadd.f32 %v684_v57, %v664_v59 }
  0xaa   :  { %v823_v38 = vmul.f32 %v807_v56, %v807_v56 }
  0xab   :  { %v624_v4 = vpop.permute.xlu1 %623 }
  0xac   :  { %v841_v14 = vsel %vm837_vm4, %v823_v38, 0.0  ;;  %v666_v21 = vadd.f32 %v624_v4, %v570_v61  ;;  %v530_v1 = vpop.permute.xlu0 %529 }
  0xad   :  { %v842_v2 = vadd.f32 %v841_v14, %v840_v53  ;;  %v571_v31 = vadd.f32 %v530_v1, %v1216_v16 }
  0xaf   :  { %v764_v6 = vpop.permute.xlu1 %763 }
  0xb0   :  { %v808_v9 = vadd.f32 %v764_v6, %v728_v58  ;;  %v686_v10 = vpop.permute.xlu0 %685 }
  0xb1   :  { %v729_v19 = vadd.f32 %v686_v10, %v665_v63 }
  0xb2   :  { %v824_v12 = vmul.f32 %v808_v9, %v808_v9 }
  0xb3   :  { %v626_v17 = vpop.permute.xlu1 %625 }
  0xb4   :  { %v843_v11 = vsel %vm837_vm4, %v824_v12, 0.0  ;;  %v532_v55 = vpop.permute.xlu0 %531  ;;  %v667_v35 = vadd.f32 %v626_v17, %v571_v31 }
  0xb5   :  { %v844_v13 = vadd.f32 %v843_v11, %v842_v2  ;;  %v572_v14 = vadd.f32 %v532_v55, %v1243_v48 }
  0xb7   :  { %v766_v20 = vpop.permute.xlu1 %765 }
  0xb8   :  { %v809_v7 = vadd.f32 %v766_v20, %v729_v19  ;;  %v688_v51 = vpop.permute.xlu0 %687 }
  0xb9   :  { %v730_v62 = vadd.f32 %v688_v51, %v666_v21 }
  0xba   :  { %v825_v15 = vmul.f32 %v809_v7, %v809_v7 }
  0xbb   :  { %v628_v26 = vpop.permute.xlu1 %627 }
  0xbc   :  { %v845_v24 = vsel %vm837_vm4, %v825_v15, 0.0  ;;  %v534_v32 = vpop.permute.xlu0 %533  ;;  %v668_v1 = vadd.f32 %v628_v26, %v572_v14 }
  0xbd   :  { %v846_v5 = vadd.f32 %v845_v24, %v844_v13  ;;  %v573_v6 = vadd.f32 %v534_v32, %v1267_v22 }
  0xbf   :  { %v768_v29 = vpop.permute.xlu1 %767 }
  0xc0   :  { %v810_v39 = vadd.f32 %v768_v29, %v730_v62  ;;  %v690_v30 = vpop.permute.xlu0 %689 }
  0xc1   :  { %v731_v37 = vadd.f32 %v690_v30, %v667_v35 }
  0xc2   :  { %v826_v33 = vmul.f32 %v810_v39, %v810_v39 }
  0xc3   :  { %v630_v34 = vpop.permute.xlu1 %629 }
  0xc4   :  { %v847_v27 = vsel %vm837_vm4, %v826_v33, 0.0  ;;  %v536_v36 = vpop.permute.xlu0 %535  ;;  %v669_v10 = vadd.f32 %v630_v34, %v573_v6 }
  0xc5   :  { %v848_v52 = vadd.f32 %v847_v27, %v846_v5  ;;  %v574_v12 = vadd.f32 %v536_v36, %v1282_v41 }
  0xc7   :  { %v770_v59 = vpop.permute.xlu1 %769 }
  0xc8   :  { %v811_v42 = vadd.f32 %v770_v59, %v731_v37  ;;  %v692_v43 = vpop.permute.xlu0 %691 }
  0xc9   :  { %v732_v9 = vadd.f32 %v692_v43, %v668_v1 }
  0xca   :  { %v827_v18 = vmul.f32 %v811_v42, %v811_v42 }
  0xcb   :  { %v632_v44 = vpop.permute.xlu1 %631 }
  0xcc   :  { %v849_v50 = vsel %vm837_vm4, %v827_v18, 0.0  ;;  %v538_v45 = vpop.permute.xlu0 %537  ;;  %v670_v19 = vadd.f32 %v632_v44, %v574_v12 }
  0xcd   :  { %v850_v46 = vadd.f32 %v849_v50, %v848_v52  ;;  %v575_v20 = vadd.f32 %v538_v45, %v1295_v60 }
  0xcf   :  { %v772_v0 = vpop.permute.xlu1 %771 }
  0xd0   :  { %v694_v47 = vpop.permute.xlu0 %693  ;;  %v812_v11 = vadd.f32 %v772_v0, %v732_v9 }
  0xd1   :  { %v733_v7 = vadd.f32 %v694_v47, %v669_v10 }
  0xd2   :  { %v828_v24 = vmul.f32 %v812_v11, %v812_v11 }
  0xd3   :  { %v634_v16 = vpop.permute.xlu1 %633 }
  0xd4   :  { %v540_v63 = vpop.permute.xlu0 %539  ;;  %v671_v51 = vadd.f32 %v634_v16, %v575_v20  ;;  %v851_v34 = vsel %vm837_vm4, %v828_v24, 0.0 }
  0xd5   :  { %v576_v15 = vadd.f32 %v540_v63, %v1305_v28  ;;  %v852_v42 = vadd.f32 %v851_v34, %v850_v46 }
  0xd7   :  { %v774_v3 = vpop.permute.xlu1 %773 }
  0xd8   :  { %v696_v40 = vpop.permute.xlu0 %695  ;;  %v813_v48 = vadd.f32 %v774_v3, %v733_v7 }
  0xd9   :  { %v734_v55 = vadd.f32 %v696_v40, %v670_v19 }
  0xda   :  { %v829_v29 = vmul.f32 %v813_v48, %v813_v48 }
  0xdb   :  { %v636_v53 = vpop.permute.xlu1 %635 }
  0xdc   :  { %v542_v54 = vpop.permute.xlu0 %541  ;;  %v672_v22 = vadd.f32 %v636_v53, %v576_v15  ;;  %v853_v36 = vsel %vm837_vm4, %v829_v29, 0.0 }
  0xdd   :  { %v577_v32 = vadd.f32 %v542_v54, %v1312_v8  ;;  %v854_v45 = vadd.f32 %v853_v36, %v852_v42 }
  0xdf   :  { %v776_v56 = vpop.permute.xlu1 %775 }
  0xe0   :  { %v698_v57 = vpop.permute.xlu0 %697  ;;  %v814_v62 = vadd.f32 %v776_v56, %v734_v55 }
  0xe1   :  { %v735_v41 = vadd.f32 %v698_v57, %v671_v51 }
  0xe2   :  { %v830_v35 = vmul.f32 %v814_v62, %v814_v62 }
  0xe3   :  { %v638_v58 = vpop.permute.xlu1 %637 }
  0xe4   :  { %v544_v61 = vpop.permute.xlu0 %543  ;;  %v673_v39 = vadd.f32 %v638_v58, %v577_v32  ;;  %v855_v18 = vsel %vm837_vm4, %v830_v35, 0.0 }
  0xe5   :  { %v578_v52 = vadd.f32 %v544_v61, %v1321_v49  ;;  %v856_v49 = vadd.f32 %v855_v18, %v854_v45 }
  0xe7   :  { %v778_v38 = vpop.permute.xlu1 %777 }
  0xe8   :  { %v700_v4 = vpop.permute.xlu0 %699  ;;  %v815_v30 = vadd.f32 %v778_v38, %v735_v41 }
  0xe9   :  { %v736_v31 = vadd.f32 %v700_v4, %v672_v22 }
  0xea   :  { %v831_v37 = vmul.f32 %v815_v30, %v815_v30 }
  0xeb   :  { %v640_v21 = vpop.permute.xlu1 %639 }
  0xec   :  { %v546_v2 = vpop.permute.xlu0 %545  ;;  %v674_v44 = vadd.f32 %v640_v21, %v578_v52  ;;  %v857_v47 = vsel %vm837_vm4, %v831_v37, 0.0 }
  0xed   :  { %v579_v16 = vadd.f32 %v546_v2, %v1328_v25  ;;  %v858_v58 = vadd.f32 %v857_v47, %v856_v49 }
  0xef   :  { %v780_v17 = vpop.permute.xlu1 %779 }
  0xf0   :  { %v702_v13 = vpop.permute.xlu0 %701  ;;  %v816_v28 = vadd.f32 %v780_v17, %v736_v31 }
  0xf1   :  { %v737_v27 = vadd.f32 %v702_v13, %v673_v39 }
  0xf2   :  { %v832_v50 = vmul.f32 %v816_v28, %v816_v28 }
  0xf3   :  { %v642_v26 = vpop.permute.xlu1 %641 }
  0xf4   :  { %v548_v5 = vpop.permute.xlu0 %547  ;;  %v859_v46 = vsel %vm837_vm4, %v832_v50, 0.0  ;;  %v675_v56 = vadd.f32 %v642_v26, %v579_v16 }
  0xf5   :  { %v580_v0 = vadd.f32 %v548_v5, %v1324_v23  ;;  %v860_v21 = vadd.f32 %v859_v46, %v858_v58 }
  0xf7   :  { %v782_v33 = vpop.permute.xlu1 %781 }
  0xf8   :  { %v704_v60 = vpop.permute.xlu0 %703  ;;  %v817_v59 = vadd.f32 %v782_v33, %v737_v27 }
  0xf9   :  { %v738_v3 = vadd.f32 %v704_v60, %v674_v44 }
  0xfa   :  { %v833_v63 = vmul.f32 %v817_v59, %v817_v59 }
  0xfb   :  { %v706_v8 = vpop.permute.xlu1 %705 }
  0xfc   :  { %v644_v43 = vpop.permute.xlu0 %643  ;;  %v861_v38 = vsel %vm837_vm4, %v833_v63, 0.0  ;;  %v739_v4 = vadd.f32 %v706_v8, %v675_v56 }
  0xfd   :  { %v676_v53 = vadd.f32 %v644_v43, %v580_v0  ;;  %v862_v9 = vadd.f32 %v861_v38, %v860_v21 }
  0xff   :  { %v708_v40 = vpop.permute.xlu1 %707 }
 0x100   :  { %v784_v54 = vpop.permute.xlu0 %783  ;;  %v740_v61 = vadd.f32 %v708_v40, %v676_v53 }
 0x101   :  { %v818_v57 = vadd.f32 %v784_v54, %v738_v3 }
 0x103   :  { %v834_v23 = vmul.f32 %v818_v57, %v818_v57  ;;  %v788_v14 = vpop.permute.xlu1 %787 }
 0x104   :  { %v820_v1 = vadd.f32 %v788_v14, %v740_v61  ;;  %v786_v25 = vpop.permute.xlu0 %785 }
 0x105   :  { %v863_v2 = vsel %vm837_vm4, %v834_v23, 0.0  ;;  %v819_v6 = vadd.f32 %v786_v25, %v739_v4 }
 0x106   :  { %v836_v10 = vmul.f32 %v820_v1, %v820_v1  ;;  %v864_v17 = vadd.f32 %v863_v2, %v862_v9 }
 0x107   :  { %v835_v12 = vmul.f32 %v819_v6, %v819_v6 }
 0x108   :  { %v867_v19 = vsel %vm837_vm4, %v836_v10, 0.0 }
 0x109   :  { %v865_v11 = vsel %vm837_vm4, %v835_v12, 0.0 }
 0x10a   :  { %v866_v13 = vadd.f32 %v865_v11, %v864_v17 }
 0x10c   :  { %v868_v20 = vadd.f32 %v867_v19, %v866_v13 }
 0x10e   :  { %869 = vadd.xlane.f32.xlu0 %v868_v20 }
 0x197   :  { %v870_v7 = vpop.xlane.xlu0 %869 }
 0x198   :  { %v871_v51 = vrot.slane %v870_v7, 4 }
 0x19a   :  { %v872_v15 = vadd.f32 %v871_v51, %v870_v7 }
 0x19c   :  { %v873_v48 = vrot.slane %v872_v15, 2 }
 0x19e   :  { %v874_v55 = vadd.f32 %v873_v48, %v872_v15 }
 0x1a0   :  { %v875_v26 = vrot.slane %v874_v55, 1 }
 0x1a2   :  { %v876_v24 = vadd.f32 %v875_v26, %v874_v55 }
 0x1a4   :  { %894 = vpush %v876_v24 }
 0x1d5   :  { %s895_s23 = spop %894 }
 0x1d6   :  { %v878_v5 = vstv %s895_s23 }
 0x1d7   :  { %879 = vst [vmem:[#allocation2] sm:$0xff] %v878_v5 }
 0x1d8   :  { %912 = shalt.err (!%p909_p4)
}
 0x1d9   :  { %889 = dma.vmem_to_hbm [thread:$0]  %s887_s18, 128, %s1369_s1, [#allocation3]  }
 0x1da   :  { %921 = dma.done.wait [#allocation3], 128  }
 0x1db   :  { %922 = vsyncadd [#allocation3], 4294967168 }
 0x1dc   :  { %893 = vsyncpa [#allocation3], 1 }

</bundles_post_ra>
